<compile_context>
chip_gen: v6e
topology: v6e:2x2x1
jax: 0.10.0
libtpu: 0.0.40
codegen_flags: <defaults>
</compile_context>

<pallas_src>
import jax
import jax.numpy as jnp
from jax.experimental import pallas as pl
from jax.experimental.pallas import tpu as pltpu


def _round_up(x, m):
    return ((x + m - 1) // m) * m


def hypernet_kernel(x_ref, w1t_ref, w2t_ref, bias_ref, o_ref):
    x = x_ref[...]                                      # (tm, dim), input dtype
    xb = x.astype(jnp.bfloat16)                         # one cast per row tile
    # linear1 (bias folded into the fused output bias): (tm, dim) @ (dim, hid)
    h = jnp.dot(xb, w1t_ref[...], preferred_element_type=jnp.float32)
    # linear2: (tm, hid) @ (hid, dim), f32 accumulation on the MXU
    y = jnp.dot(h.astype(jnp.bfloat16), w2t_ref[...],
                preferred_element_type=jnp.float32)
    # residual + fused bias, exact in f32
    o_ref[...] = (x.astype(jnp.float32) + y + bias_ref[...]).astype(o_ref.dtype)


def prepare_params(w1, b1, w2, b2):
    """One-time (load-time) parameter prep: transpose, bf16 cast, bias fusion.

    w1: (2*dim, dim), b1: (2*dim,), w2: (dim, 2*dim), b2: (dim,)  (torch layout).
    """
    hid, dim = w1.shape
    assert w2.shape == (dim, hid) and b1.shape == (hid,) and b2.shape == (dim,)
    w1f = jnp.asarray(w1, jnp.float32)
    w2f = jnp.asarray(w2, jnp.float32)
    w1t = w1f.T.astype(jnp.bfloat16)                    # (dim, hid), MXU layout
    w2t = w2f.T.astype(jnp.bfloat16)                    # (hid, dim), MXU layout
    # linear2(linear1(x)) = x @ W1^T @ W2^T + (b1 @ W2^T + b2)   (no activation)
    b_eff = (jnp.asarray(b2, jnp.float32)
             + jnp.asarray(b1, jnp.float32) @ w2f.T).reshape(1, dim)
    return w1t, w2t, b_eff


def hypernetwork_module_apply(x, params, *, tm=None):
    """x: (..., dim); params from prepare_params()."""
    w1t, w2t, b_eff = params
    dim, hid = w1t.shape
    orig_shape = x.shape
    assert orig_shape[-1] == dim

    x2d = x.reshape(-1, dim)
    M = x2d.shape[0]
    itemsize = x2d.dtype.itemsize
    row_align = 8 if itemsize == 4 else 16              # sublane packing

    # ---- row-tile selection -------------------------------------------------
    if tm is None:
        tm = 1024 if itemsize == 4 else 2048             # big tiles -> HBM roofline
    tm = max(row_align, min(_round_up(tm, row_align), _round_up(M, row_align)))
    # keep >= 2 row tiles so the "parallel" axis can feed both v7x TensorCores
    if M >= 2 * row_align:
        tm = min(tm, _round_up(pl.cdiv(M, 2), row_align))

    w_itemsize = w1t.dtype.itemsize                      # bf16 = 2
    weight_bytes = (w1t.size + w2t.size) * w_itemsize + b_eff.size * 4

    def vmem_need(t):
        io = 2 * 2 * t * dim * itemsize                  # x in + out tiles, double-buffered
        w = 2 * weight_bytes                             # conservative: double-buffered windows
        temps = t * dim * (2 + 4 + 4) + t * hid * (4 + 2)  # xb, y, residual, h (f32 + bf16)
        return io + w + temps

    try:
        phys_vmem = pltpu.get_tpu_info().vmem_capacity_bytes
    except Exception:
        phys_vmem = 64 << 20                             # conservative (v7x per-TC)
    budget = int(phys_vmem * 0.7)
    while vmem_need(tm) > budget and tm > row_align:
        tm = max(row_align, _round_up(tm // 2, row_align))

    Mp = _round_up(M, tm)
    if Mp != M:
        x2d = jnp.pad(x2d, ((0, Mp - M), (0, 0)))

    vmem_limit = int(min(max(vmem_need(tm) + (4 << 20), 32 << 20),
                         int(phys_vmem * 0.9)))

    flops = 4 * Mp * dim * hid                           # two matmuls, 2*M*K*N each
    bytes_accessed = (2 * Mp * dim * itemsize            # x read + out write
                      + weight_bytes)                    # weights resident: counted once

    out = pl.pallas_call(
        hypernet_kernel,
        out_shape=jax.ShapeDtypeStruct((Mp, dim), x2d.dtype),
        grid_spec=pltpu.PrefetchScalarGridSpec(
            num_scalar_prefetch=0,
            grid=(Mp // tm,),
            in_specs=[
                pl.BlockSpec((tm, dim), lambda i: (i, 0)),    # x row tile
                pl.BlockSpec((dim, hid), lambda i: (0, 0)),   # W1^T (resident, fetched once)
                pl.BlockSpec((hid, dim), lambda i: (0, 0)),   # W2^T (resident, fetched once)
                pl.BlockSpec((1, dim), lambda i: (0, 0)),     # fused bias (resident)
            ],
            out_specs=pl.BlockSpec((tm, dim), lambda i: (i, 0)),
        ),
        compiler_params=pltpu.CompilerParams(
            dimension_semantics=("parallel",),
            vmem_limit_bytes=vmem_limit,
        ),
        cost_estimate=pl.CostEstimate(flops=flops, transcendentals=0,
                                      bytes_accessed=bytes_accessed),
    )(x2d, w1t, w2t, b_eff)

    if Mp != M:
        out = out[:M]
    return out.reshape(orig_shape)


def hypernetwork_module(x, w1, b1, w2, b2, *, tm=None):
    """Convenience one-shot entry point (prefer prepare_params() once at load time)."""
    return hypernetwork_module_apply(x, prepare_params(w1, b1, w2, b2), tm=tm)


if __name__ == "__main__":
    # Small shapes consistent with the module: a (batch, seq, dim) activation stream.
    batch, seq, dim = 2, 8, 128
    hid = dim * 2

    key = jax.random.PRNGKey(0)
    kx, kw1, kw2, kb1, kb2 = jax.random.split(key, 5)

    x = jax.random.normal(kx, (batch, seq, dim), dtype=jnp.float32)

    # torch.nn.Linear layout (out_features, in_features). Module init uses
    # N(0, 0.01) weights / zero biases; use small nonzero biases here (as a
    # loaded state_dict would) to exercise the fused-bias path.
    w1 = 0.01 * jax.random.normal(kw1, (hid, dim), dtype=jnp.float32)
    b1 = 0.01 * jax.random.normal(kb1, (hid,), dtype=jnp.float32)
    w2 = 0.01 * jax.random.normal(kw2, (dim, hid), dtype=jnp.float32)
    b2 = 0.01 * jax.random.normal(kb2, (dim,), dtype=jnp.float32)

    params = prepare_params(w1, b1, w2, b2)       # once, at "load" time
    out = hypernetwork_module_apply(x, params)
    out = jax.block_until_ready(out)

    # Pure-JAX f32 reference: x + linear2(linear1(x)). Kernel uses bf16 MXU
    # inputs with f32 accumulation and exact f32 residual/bias, so tolerance is
    # sized for bf16 mantissas.
    h_ref = jnp.einsum("bsd,hd->bsh", x, w1) + b1
    ref = x + jnp.einsum("bsh,dh->bsd", h_ref, w2) + b2

    assert out.shape == x.shape
    err = float(jnp.max(jnp.abs(out - ref)))
    assert jnp.allclose(out, ref, atol=3e-3, rtol=3e-3), f"max abs err {err}"

    print("KERNEL_OK")
</pallas_src>

<mosaic_0001>
module attributes {stable_mosaic.version = 11 : i64} {
  func.func @hypernet_kernel(%arg0: i32, %arg1: memref<8x128xf32, #tpu.memory_space<vmem>>, %arg2: memref<128x256xbf16, #tpu.memory_space<vmem>>, %arg3: memref<256x128xbf16, #tpu.memory_space<vmem>>, %arg4: memref<1x128xf32, #tpu.memory_space<vmem>>, %arg5: memref<8x128xf32, #tpu.memory_space<vmem>>) attributes {dimension_semantics = [#tpu.dimension_semantics<parallel>], iteration_bounds = array<i64: 2>, scalar_prefetch = 0 : i64, scratch_operands = 0 : i64, tpu.core_type = #tpu.core_type<tc>, window_params = [{transform_indices = @transform_0, window_bounds = array<i64: 8, 128>}, {pipeline_mode = #tpu.pipeline_mode<synchronous>, transform_indices = @transform_1, window_bounds = array<i64: 128, 256>}, {pipeline_mode = #tpu.pipeline_mode<synchronous>, transform_indices = @transform_2, window_bounds = array<i64: 256, 128>}, {pipeline_mode = #tpu.pipeline_mode<synchronous>, transform_indices = @transform_3, window_bounds = array<i64: 1, 128>}, {transform_indices = @transform_4, window_bounds = array<i64: 8, 128>}]} {
    %c0 = arith.constant 0 : index
    %c0_0 = arith.constant 0 : index
    %0 = vector.load %arg1[%c0, %c0_0] : memref<8x128xf32, #tpu.memory_space<vmem>>, vector<8x128xf32>
    %1 = arith.truncf %0 : vector<8x128xf32> to vector<8x128xbf16>
    %c0_1 = arith.constant 0 : index
    %c0_2 = arith.constant 0 : index
    %2 = vector.load %arg2[%c0_1, %c0_2] : memref<128x256xbf16, #tpu.memory_space<vmem>>, vector<128x256xbf16>
    %cst = arith.constant dense<0.000000e+00> : vector<8x256xf32>
    %3 = tpu.matmul %1, %2, %cst {dimension_numbers = #tpu.dot_dimension_numbers<[1], [0], [0], [1], [0, 0, 1, 1], [], []>} : vector<8x128xbf16>, vector<128x256xbf16>, vector<8x256xf32> -> vector<8x256xf32>
    %4 = arith.truncf %3 : vector<8x256xf32> to vector<8x256xbf16>
    %c0_3 = arith.constant 0 : index
    %c0_4 = arith.constant 0 : index
    %5 = vector.load %arg3[%c0_3, %c0_4] : memref<256x128xbf16, #tpu.memory_space<vmem>>, vector<256x128xbf16>
    %cst_5 = arith.constant dense<0.000000e+00> : vector<8x128xf32>
    %6 = tpu.matmul %4, %5, %cst_5 {dimension_numbers = #tpu.dot_dimension_numbers<[1], [0], [0], [1], [0, 0, 1, 1], [], []>} : vector<8x256xbf16>, vector<256x128xbf16>, vector<8x128xf32> -> vector<8x128xf32>
    %7 = arith.addf %0, %6 : vector<8x128xf32>
    %c0_6 = arith.constant 0 : index
    %c0_7 = arith.constant 0 : index
    %8 = vector.load %arg4[%c0_6, %c0_7] : memref<1x128xf32, #tpu.memory_space<vmem>>, vector<1x128xf32>
    %9 = vector.broadcast %8 : vector<1x128xf32> to vector<8x128xf32>
    %10 = arith.addf %7, %9 : vector<8x128xf32>
    %c0_8 = arith.constant 0 : index
    %c0_9 = arith.constant 0 : index
    %11 = vector.load %arg5[%c0_8, %c0_9] : memref<8x128xf32, #tpu.memory_space<vmem>>, vector<8x128xf32>
    tpu.vector_store %arg5[%c0_8, %c0_9], %10 {strides = array<i32>} : memref<8x128xf32, #tpu.memory_space<vmem>>, vector<8x128xf32>,
    return
  }
  func.func @transform_0(%arg0: i32) -> (i32, i32) {
    %c0_i32 = arith.constant 0 : i32
    %c0_i32_0 = arith.constant 0 : i32
    return %arg0, %c0_i32 : i32, i32
  }
  func.func @transform_1(%arg0: i32) -> (i32, i32) {
    %c0_i32 = arith.constant 0 : i32
    %c0_i32_0 = arith.constant 0 : i32
    %c0_i32_1 = arith.constant 0 : i32
    return %c0_i32, %c0_i32_0 : i32, i32
  }
  func.func @transform_2(%arg0: i32) -> (i32, i32) {
    %c0_i32 = arith.constant 0 : i32
    %c0_i32_0 = arith.constant 0 : i32
    %c0_i32_1 = arith.constant 0 : i32
    return %c0_i32, %c0_i32_0 : i32, i32
  }
  func.func @transform_3(%arg0: i32) -> (i32, i32) {
    %c0_i32 = arith.constant 0 : i32
    %c0_i32_0 = arith.constant 0 : i32
    %c0_i32_1 = arith.constant 0 : i32
    return %c0_i32, %c0_i32_0 : i32, i32
  }
  func.func @transform_4(%arg0: i32) -> (i32, i32) {
    %c0_i32 = arith.constant 0 : i32
    %c0_i32_0 = arith.constant 0 : i32
    return %arg0, %c0_i32 : i32, i32
  }
}

</mosaic_0001>

<bundles_post_ra>
// kernel: tpu_custom_call.1
= control target key start
LH: loop header
LB: loop body
LE: loop exit
PB: predicated region body
PF: predicated region fallthrough
CT: control target
= control target key end

     0   :  { %9 = vsyncpa [#allocation3], 0  ;;  %s1207_s0 = inlined_call_operand.hbm [shape: f32[16,128], index: 0, kind: input, shape index: {}]   ;;  %s1208_s1 = inlined_call_operand.hbm [shape: bf16[128,256], index: 1, kind: input, shape index: {}]   ;;  %s1209_s2 = inlined_call_operand.hbm [shape: bf16[256,128], index: 2, kind: input, shape index: {}]   ;;  %s1210_s3 = inlined_call_operand.vmem [shape: f32[1,128], index: 3, kind: input, shape index: {}]   ;;  %s1211_s4 = inlined_call_operand.hbm [shape: f32[16,128], index: 4, kind: output, shape index: {}]  }
   0x1   :  { %11 = vsyncpa [#allocation3 + $0x1], 0 }
   0x2   :  { %12 = vsyncpa [#allocation6], 0 }
   0x3   :  { %13 = vsyncpa [#allocation4], 0 }
   0x4   :  { %15 = vsyncpa [#allocation4 + $0x1], 0  ;;  %s1032_s15 = smov 0   ;;  %s1034_s16 = smov 0  }
   0x5   :  { %s1036_s17 = smov 0   ;;  %s1038_s18 = smov 0  }
   0x6 LB: > { %s1053_s19 = sadd.s32 4294967295, %s996_s18   ;;  %s665_s20 = sadd.s32 4294967294, %s996_s18   ;;  %s996_s18 = sphi %s1038_s18, %s1233_s18   ;;  %s992_s17 = sphi %s1036_s17, %s1232_s17   ;;  %s988_s16 = sphi %s1034_s16, %s1231_s16   ;;  %s984_s15 = sphi %s1032_s15, %s1230_s15  }
   0x7   : > { %p41_p0 = scmp.ne.s32.totalorder %s988_s16, %s984_s15  ;;  %p1212_p1 = scmp.eq.s32.totalorder %s1053_s19, 0 }
   0x8   : > { %p134_p3 = scmp.eq.s32.totalorder %s665_s20, 1  ;;  %p666_p5 = scmp.ge.s32.totalorder %s996_s18, 1 }
   0x9   : > { %p1062_p4 = por %p1212_p1, %p41_p0  ;;  %p141_p7 = scmp.lt.s32.totalorder %s996_s18, 3 }
   0xa   : > { %p1067_p6 = por %p134_p3, %p41_p0  ;;  %s998_s24 = smov [#allocation5]  }
   0xb   : > { %s1216_s21 = scalar_select %p1062_p4, 1, 0 }
   0xc   : > { %s1217_s22 = scalar_select %p1067_p6, 1, 0 }
   0xd   : > { %p1072_p8 = pnand %p666_p5, %p141_p7  ;;  %s153_s25 = sshll.u32 %s998_s24, 4  ;;  %s154_s25 = int_to_ptr.vmem [resolvable:$true] %s153_s25 }
   0xe   : > { %s999_s27 = smov [#allocation7]   ;;  %s859_s29 = scalar_lea.vmem %s154_s25, 2048 }
   0xf   : > { %s1218_s23 = scalar_select %p1072_p8, 1, 0 }
  0x10   : > { %p748_p9 = pneg %p1072_p8  ;;  %s166_s28 = sshll.u32 %s999_s27, 4  ;;  %s167_s28 = int_to_ptr.vmem [resolvable:$true] %s166_s28 }
  0x11   : > { %p860_p13 = scmp.ne.s32.totalorder %s154_s25, %s859_s29  ;;  %p867_p5 = scmp.lt.s32.totalorder %s154_s25, %s154_s25 }
  0x12   : > { %p1081_p11 = pnand %p748_p9, %p1212_p1  ;;  %p868_p7 = scmp.lt.s32.totalorder %s859_s29, %s859_s29 }
  0x14   : > { %p850_p12 = pneg %p1081_p11  ;;  %p869_p10 = por %p868_p7, %p867_p5 }
  0x16   : > { %p862_p0 = pnand %p860_p13, %p850_p12 }
  0x18   : > { %p863_p3 = pneg %p862_p0 }
  0x1a   : > { %p870_p9 = pnand %p869_p10, %p863_p3 }
  0x1c   : > { %873 = shalt.err (!%p870_p9)
}
  0x1d   : > { %s1000_s30 = smov 128   ;;  %s1001_s5 = smov 8  }
  0x1e   : > { %751 = dma.hbm_to_vmem [thread:$0]  (!%p1081_p11), %s1208_s1, 2048, %s154_s25, [#allocation6], %s1000_s30, %s1000_s30, %s1001_s5  }
  0x1f   : > { %s885_s8 = scalar_lea.vmem %s167_s28, 2048  ;;  %p893_p2 = scmp.lt.s32.totalorder %s167_s28, %s167_s28 }
  0x20   : > { %p886_p1 = scmp.ne.s32.totalorder %s167_s28, %s885_s8  ;;  %p894_p6 = scmp.lt.s32.totalorder %s885_s8, %s885_s8 }
  0x22   : > { %p888_p13 = pnand %p886_p1, %p850_p12  ;;  %p895_p5 = por %p894_p6, %p893_p2 }
  0x24   : > { %p889_p0 = pneg %p888_p13 }
  0x26   : > { %p896_p10 = pnand %p895_p5, %p889_p0 }
  0x28   : > { %899 = shalt.err (!%p896_p10)
}
  0x29   : > { %s1002_s9 = smov 64   ;;  %s1003_s10 = smov 4  }
  0x2a   : > { %754 = dma.hbm_to_vmem [thread:$0]  (!%p1081_p11), %s1209_s2, 2048, %s167_s28, [#allocation6], %s1002_s9, %s1002_s9, %s1003_s10  }
  0x2b   : > { %s1104_s13 = sadd.s32 1, %s996_s18   ;;  %s28_s20 = sadd.s32 1, %s992_s17 }
  0x2c   : > { %s25_s14 = ssub.s32 %s996_s18, %s1104_s13  ;;  %p35_p2 = scmp.ne.s32.totalorder %s992_s17, %s988_s16 }
  0x2d   : > { %p26_p1 = scmp.eq.s32.totalorder %s25_s14, 0  ;;  %p36_p6 = scmp.eq.s32.totalorder %s996_s18, 0 }
  0x2e   : > { %p1220_p3 = scmp.eq.s32.totalorder %s1053_s19, 1  ;;  %p765_p9 = scmp.lt.s32.totalorder %s996_s18, 2 }
  0x2f   : > { %s1113_s24 = scalar_select %p26_p1, %s992_s17, %s28_s20  }
  0x30   : > { %p37_p12 = por %p36_p6, %p35_p2  ;;  %p1117_p7 = por %p1220_p3, %p35_p2 }
  0x31   : > { %s183_s26 = sand.u32 1, %s992_s17   ;;  %s671_s28 = sshll.u32 %s996_s18, 7 }
  0x32   : > { %s1221_s25 = scalar_select %p1117_p7, 1, 0 }
  0x33   : > { %s670_s27 = sshll.u32 %s183_s26, 3  ;;  %s1127_s5 = scalar_lea.hbm %s1207_s0, %s671_s28 }
  0x34   : > { %s187_s6 = scalar_lea.vmem [#allocation2], %s670_s27  ;;  %p1129_p11 = pnand %p765_p9, %p37_p12 }
  0x35   : > { %s194_s7 = sshll.u32 %s187_s6, 4  ;;  %s184_s9 = scalar_lea.sflag [#allocation3], %s183_s26  ;;  %s195_s7 = int_to_ptr.vmem [resolvable:$true] %s194_s7 }
  0x36   : > { %s900_s10 = scalar_lea.hbm %s1127_s5, 128  ;;  %p902_p0 = pneg %p1129_p11 }
  0x37   : > { %p901_p13 = scmp.ne.s32.totalorder %s1127_s5, %s900_s10  ;;  %s905_s14 = scalar_lea.hbm %s1207_s0, 256 }
  0x38   : > { %p906_p1 = scmp.lt.s32.totalorder %s1127_s5, %s1207_s0  ;;  %p907_p2 = scmp.lt.s32.totalorder %s905_s14, %s900_s10 }
  0x39   : > { %p903_p5 = pnand %p902_p0, %p901_p13 }
  0x3a   : > { %p908_p6 = por %p907_p2, %p906_p1 }
  0x3b   : > { %p904_p10 = pneg %p903_p5 }
  0x3d   : > { %p909_p12 = pnand %p908_p6, %p904_p10 }
  0x3f   : > { %912 = shalt.err (!%p909_p12)
}
  0x40   : > { %s913_s28 = scalar_lea.vmem %s195_s7, 128  ;;  %s1004_s26 = smov [#allocation2]  }
  0x41   : > { %p914_p3 = scmp.ne.s32.totalorder %s195_s7, %s913_s28  ;;  %s918_s29 = sshll.u32 %s1004_s26, 4  ;;  %s919_s29 = int_to_ptr.vmem [resolvable:$false] %s918_s29 }
  0x42   : > { %s920_s30 = scalar_lea.vmem %s919_s29, 256  ;;  %p921_p13 = scmp.lt.s32.totalorder %s195_s7, %s919_s29 }
  0x43   : > { %p916_p9 = pnand %p914_p3, %p902_p0  ;;  %p922_p5 = scmp.lt.s32.totalorder %s920_s30, %s913_s28 }
  0x45   : > { %p917_p7 = pneg %p916_p9  ;;  %p923_p4 = por %p922_p5, %p921_p13 }
  0x47   : > { %p924_p8 = pnand %p923_p4, %p917_p7 }
  0x49   : > { %927 = shalt.err (!%p924_p8)
}
  0x4a   : > { %758 = dma.hbm_to_vmem [thread:$0]  (!%p1129_p11), %s1127_s5, 128, %s195_s7, %s184_s9  }
  0x4b   : > { %p1223_p10 = scmp.ne.s32.totalorder %s1218_s23, 0 }
  0x4c   : > { %s1150_s6 = sand.u32 (!%p1223_p10), 1, %s988_s16   ;;  %p1224_p4 = scmp.ne.s32.totalorder (!%p1223_p10), %s1216_s21, 0 }
  0x4d   : > { %203 = sbr.rel (%p1223_p10) target bundleno = 531 (0x213), region = 36  ;;  %s673_s10 = sshll.u32 (!%p1223_p10), %s1150_s6, 3 }
  0x4e   : > { %s206_s11 = scalar_lea.sflag (!%p1223_p10), [#allocation3], %s1150_s6  ;;  %s1156_s12 = scalar_lea.vmem (!%p1223_p10), [#allocation2], %s673_s10 }
  0x52   : > { %971 = dma.done.wait (%p1224_p4), %s206_s11, 128  }
  0x53   : > { %973 = vsyncadd (%p1224_p4), %s206_s11, 4294967168  ;;  %p1225_p8 = scmp.eq.s32.totalorder %s1053_s19, 0 }
  0x55   : > { %975 = dma.done.wait (%p1225_p8), [#allocation6], 4096   ;;  %p1226_p7 = pmov %p1225_p8 }
  0x56   : > { %v1005_v0 = vmov 0   ;;  %v808_v1 = vld [vmem:[#allocation5 + $0x74] ss:$8 sps:$4 sm:$0xff]   ;;  %v810_v2 = vld [vmem:[#allocation5 + $0x70] ss:$8 sps:$4 sm:$0xff]   ;;  %v836_v15 = vld [vmem:[#allocation7 + $0x68] sm:$0xff]  }
  0x57   : > { %977 = vsyncadd (%p1226_p7), [#allocation6], 4294963200  ;;  %373 = vmatprep.mubr.bf16.mxu0 %v1005_v0  ;;  %341 = vmatprep.subr.bf16.mxu0 %v808_v1  ;;  %v811_v3 = vld [vmem:[#allocation5 + $0x64] ss:$8 sps:$4 sm:$0xff]   ;;  %v813_v4 = vld [vmem:[#allocation5 + $0x60] ss:$8 sps:$4 sm:$0xff]  }
  0x58   : > { %342 = vmatpush1.bf16.msra.mxu0 %v810_v2  ;;  %v814_v5 = vld [vmem:[#allocation5 + $0x54] ss:$8 sps:$4 sm:$0xff]   ;;  %v816_v6 = vld [vmem:[#allocation5 + $0x50] ss:$8 sps:$4 sm:$0xff]   ;;  %v817_v7 = vld [vmem:[#allocation5 + $0x44] ss:$8 sps:$4 sm:$0xff]  }
  0x59   : > { %343 = vmatprep.subr.bf16.mxu0 %v811_v3  ;;  %v819_v8 = vld [vmem:[#allocation5 + $0x40] ss:$8 sps:$4 sm:$0xff]   ;;  %v820_v9 = vld [vmem:[#allocation5 + $0x34] ss:$8 sps:$4 sm:$0xff]   ;;  %v822_v12 = vld [vmem:[#allocation5 + $0x30] ss:$8 sps:$4 sm:$0xff]  }
  0x5a   : > { %v832_v10 = vld [vmem:[#allocation7 + $0x78] sm:$0xff]   ;;  %v834_v13 = vld [vmem:[#allocation7 + $0x70] sm:$0xff]   ;;  %v823_v16 = vld [vmem:[#allocation5 + $0x24] ss:$8 sps:$4 sm:$0xff]   ;;  %s711_s5 = sshll.u32 %s1053_s19, 7  ;;  %s241_s7 = scalar_lea.vmem [#allocation8], %s673_s10 }
  0x5b   : > { %v833_v11 = vld [vmem:[#allocation7 + $0x38] sm:$0xff]   ;;  %714 = vmatprep.subr.bf16.mxu1 %v832_v10  ;;  %v835_v14 = vld [vmem:[#allocation7 + $0x30] sm:$0xff]   ;;  %v825_v17 = vld [vmem:[#allocation5 + $0x20] ss:$8 sps:$4 sm:$0xff]   ;;  %s576_s8 = sshll.u32 %s241_s7, 4  ;;  %s574_s20 = scalar_lea.hbm %s1211_s4, %s711_s5  ;;  %s577_s8 = int_to_ptr.vmem [resolvable:$true] %s576_s8 }
  0x5c   : > { %344 = vmatpush1.bf16.msra.mxu0 %v813_v4  ;;  %715 = vmatpush3.bf16.msra.mxu1 %v833_v11  ;;  %v837_v18 = vld [vmem:[#allocation7 + $0x28] sm:$0xff]   ;;  %v838_v19 = vld [vmem:[#allocation7 + $0x60] sm:$0xff]   ;;  %v826_v20 = vld [vmem:[#allocation5 + $0x14] ss:$8 sps:$4 sm:$0xff]   ;;  %s563_s27 = scalar_lea.sflag [#allocation4], %s1150_s6  ;;  %s928_s28 = scalar_lea.vmem %s577_s8, 128 }
  0x5d   : > { %345 = vmatprep.subr.bf16.mxu0 %v814_v5  ;;  %716 = vmatprep.subr.bf16.mxu1 %v834_v13  ;;  %v828_v21 = vld [vmem:[#allocation5 + $0x10] ss:$8 sps:$4 sm:$0xff]   ;;  %v839_v22 = vld [vmem:[#allocation7 + $0x20] sm:$0xff]   ;;  %v844_v31 = vld [vmem:[#allocation7 + $0x48] sm:$0xff]   ;;  %p929_p11 = scmp.ne.s32.totalorder %s577_s8, %s928_s28  ;;  %p1227_p0 = scmp.ne.s32.totalorder %s1221_s25, 0 }
  0x5e   : > { %v840_v23 = vld [vmem:[#allocation7 + $0x58] sm:$0xff]   ;;  %v829_v24 = vld [vmem:[#allocation5 + $0x4] ss:$8 sps:$4 sm:$0xff]   ;;  %v831_v26 = vld [vmem:[#allocation5] ss:$8 sps:$4 sm:$0xff]   ;;  %s1006_s26 = smov [#allocation8]  }
  0x5f   : > { %v841_v25 = vld [vmem:[#allocation7 + $0x18] sm:$0xff]   ;;  %v842_v28 = vld [vmem:[#allocation7 + $0x50] sm:$0xff]   ;;  %v845_v32 = vld [vmem:[#allocation7 + $0x8] sm:$0xff]   ;;  %p930_p1 = pnand %p929_p11, %p1227_p0  ;;  %s932_s19 = sshll.u32 %s1006_s26, 4  ;;  %s933_s19 = int_to_ptr.vmem [resolvable:$false] %s932_s19 }
  0x60   : > { %346 = vmatpush1.bf16.msra.mxu0 %v816_v6  ;;  %717 = vmatpush3.bf16.msra.mxu1 %v835_v14  ;;  %v243_v27 = vld [vmem:[%s1156_s12] sm:$0xff]  ;;  %v846_v33 = vld [vmem:[#allocation7 + $0x40] sm:$0xff]   ;;  %s934_s29 = scalar_lea.vmem %s933_s19, 256  ;;  %p935_p6 = scmp.lt.s32.totalorder %s577_s8, %s933_s19 }
  0x61   : > { %347 = vmatprep.subr.bf16.mxu0 %v817_v7  ;;  %718 = vmatprep.subr.bf16.mxu1 %v836_v15  ;;  %v244_v29 = vpack.c.bf16 %v243_v27, %v243_v27  ;;  %v843_v30 = vld [vmem:[#allocation7 + $0x10] sm:$0xff]   ;;  %v847_v34 = vld [vmem:[#allocation7] sm:$0xff]   ;;  %p931_p2 = pneg %p930_p1  ;;  %p936_p12 = scmp.lt.s32.totalorder %s934_s29, %s928_s28 }
  0x62   : > { %v709_v44 = vld [vmem:[%s1210_s3] ss:$0 sm:$0xff] }
  0x63   : > { %p937_p3 = por %p936_p12, %p935_p6 }
  0x64   : > { %348 = vmatpush1.bf16.msra.mxu0 %v819_v8  ;;  %719 = vmatpush3.bf16.msra.mxu1 %v837_v18 }
  0x65   : > { %349 = vmatprep.subr.bf16.mxu0 %v820_v9  ;;  %720 = vmatprep.subr.bf16.mxu1 %v838_v19  ;;  %p938_p9 = pnand %p937_p3, %p931_p2 }
  0x68   : > { %350 = vmatpush1.bf16.msra.mxu0 %v822_v12  ;;  %721 = vmatpush3.bf16.msra.mxu1 %v839_v22 }
  0x69   : > { %351 = vmatprep.subr.bf16.mxu0 %v823_v16  ;;  %722 = vmatprep.subr.bf16.mxu1 %v840_v23 }
  0x6c   : > { %352 = vmatpush1.bf16.msra.mxu0 %v825_v17  ;;  %723 = vmatpush3.bf16.msra.mxu1 %v841_v25 }
  0x6d   : > { %353 = vmatprep.subr.bf16.mxu0 %v826_v20  ;;  %724 = vmatprep.subr.bf16.mxu1 %v842_v28 }
  0x70   : > { %354 = vmatpush1.bf16.msra.mxu0 %v828_v21  ;;  %725 = vmatpush3.bf16.msra.mxu1 %v843_v30 }
  0x71   : > { %355 = vmatprep.subr.bf16.mxu0 %v829_v24  ;;  %726 = vmatprep.subr.bf16.mxu1 %v844_v31 }
  0x74   : > { %356 = vmatpush1.bf16.msra.mxu0 %v831_v26  ;;  %727 = vmatpush3.bf16.msra.mxu1 %v845_v32 }
  0x75   : > { %728 = vmatprep.subr.bf16.mxu1 %v846_v33 }
  0x77   : > { %374 = vmatmul.mubr.bf16.vlgmr.msra.gmra.mxu0 %v244_v29 }
  0x78   : > { %729 = vmatpush3.bf16.msra.mxu1 %v847_v34 }
 0x137   : > { %v375_v35 = vpop.f32.mrf.mxu0 }
 0x138   : > { %v382_v38 = vpack.c.bf16 %v375_v35, %v375_v35 }
 0x139   : > { %v377_v36 = vpop.f32.mrf.mxu0 }
 0x13a   : > { %v383_v37 = vpack.c.bf16 %v377_v36, %v377_v36 }
 0x13b   : > { %v379_v39 = vpop.f32.mrf.mxu0 }
 0x13c   : > { %544 = vmatprep.mubr.bf16.mxu1 %v383_v37 }
 0x13d   : > { %v380_v40 = vpop.f32.mrf.mxu0  ;;  %545 = vmatmul.mubr.bf16.vlgmr.msra.gmra.mxu1 %v382_v38 }
 0x1fd   : > { %v730_v41 = vpop.f32.mrf.mxu1 }
 0x1ff   : > { %v731_v42 = vpop.f32.mrf.mxu1 }
 0x200   : > { %v732_v43 = vadd.f32 %v731_v42, %v730_v41 }
 0x201   : > { %v733_v45 = vpop.f32.mrf.mxu1 }
 0x202   : > { %v552_v46 = vadd.f32 %v732_v43, %v243_v27 }
 0x203   : > { %v734_v47 = vpop.f32.mrf.mxu1 }
 0x204   : > { %v560_v48 = vadd.f32 %v709_v44, %v552_v46 }
 0x206   : > { %561 = vst [vmem:[%s241_s7] sm:$0xff] %v560_v48 }
 0x207   : > { %941 = shalt.err (!%p938_p9)
}
 0x208   : > { %s942_s30 = scalar_lea.hbm %s574_s20, 128  ;;  %s946_s11 = scalar_lea.hbm %s1211_s4, 256 }
 0x209   : > { %p943_p13 = scmp.ne.s32.totalorder %s574_s20, %s942_s30  ;;  %p947_p4 = scmp.lt.s32.totalorder %s574_s20, %s1211_s4 }
 0x20a   : > { %p948_p8 = scmp.lt.s32.totalorder %s946_s11, %s942_s30 }
 0x20b   : > { %p944_p5 = pnand %p943_p13, %p1227_p0 }
 0x20c   : > { %p949_p7 = por %p948_p8, %p947_p4 }
 0x20d   : > { %p945_p10 = pneg %p944_p5 }
 0x20f   : > { %p950_p11 = pnand %p949_p7, %p945_p10 }
 0x211   : > { %953 = shalt.err (!%p950_p11)
}
 0x212   : > { %746 = dma.vmem_to_hbm [thread:$0]  (%p1227_p0), %s577_s8, 128, %s574_s20, %s563_s27  }
 0x213 PF: > { %s588_s23 = sand.u32 1, %s984_s15   ;;  %p1228_p1 = scmp.ne.s32.totalorder %s1217_s22, 0 }
 0x214   : > { %p1229_p2 = scmp.ge.s32.totalorder %s996_s18, 2  ;;  %s589_s5 = scalar_lea.sflag [#allocation4], %s588_s23 }
 0x216   : > { %p760_p6 = pnand %p1229_p2, %p1228_p1 }
 0x218   : > { %p761_p12 = pneg %p760_p6 }
 0x21a   : > { %979 = dma.done.wait (%p761_p12), %s589_s5, 128  }
 0x21b   : > { %981 = vsyncadd (%p761_p12), %s589_s5, 4294967168  ;;  %p18_p3 = scmp.ge.s32.totalorder %s1104_s13, 4   ;;  %s1230_s15 = smov %s988_s16 }
 0x21c   : > { %s1231_s16 = smov %s992_s17  ;;  %s1232_s17 = smov %s1113_s24 }
 0x21d   : > { %s1233_s18 = smov %s1104_s13  ;;  %20 = sbr.rel (!%p18_p3) target bundleno = 6 (0x6), region = 89 }
 0x222   :  { %594 = vsyncpa [#allocation3], 1 }
 0x223   :  { %596 = vsyncpa [#allocation3 + $0x1], 1 }
 0x224   :  { %597 = vsyncpa [#allocation6], 1 }
 0x225   :  { %598 = vsyncpa [#allocation4], 1 }
 0x226   :  { %600 = vsyncpa [#allocation4 + $0x1], 1 }

</bundles_post_ra>
